<compile_context>
chip_gen: v7x
topology: tpu7x:2x2x1
jax: 0.10.0
libtpu: 0.0.40
codegen_flags: <defaults>
</compile_context>

<pallas_src>
import functools

import jax
import jax.numpy as jnp
from jax.experimental import pallas as pl
from jax.experimental.pallas import tpu as pltpu

L1_SIZE = 64
L2_SIZE = 256
LANE = 128


def _round_up(n, m):
    return ((n + m - 1) // m) * m


def weight_encoder_kernel(x_ref, w1_ref, b1_ref, w2_ref, b2_ref, w3_ref, b3_ref, o_ref):
    # x_ref: [TB, d_in] bf16 ; weights bf16 ; biases f32 ; o_ref: [TB, d_out_pad] f32
    x = x_ref[...]

    # fc1 (+ folded bn1) -> relu
    h1 = jnp.dot(x, w1_ref[...], preferred_element_type=jnp.float32) + b1_ref[...]
    h1 = jnp.maximum(h1, 0.0)
    # dropout1: identity in eval mode

    # fc2 (+ folded bn2) -> relu
    h2 = jnp.dot(h1.astype(jnp.bfloat16), w2_ref[...],
                 preferred_element_type=jnp.float32) + b2_ref[...]
    h2 = jnp.maximum(h2, 0.0)
    # dropout2: identity in eval mode

    # fc3 (output lane-padded to a multiple of 128 for dense stores)
    out = jnp.dot(h2.astype(jnp.bfloat16), w3_ref[...],
                  preferred_element_type=jnp.float32) + b3_ref[...]
    o_ref[...] = out.astype(o_ref.dtype)


@functools.partial(jax.jit, static_argnames=("output_size", "tile_b"))
def weight_encoder_forward(x, params, *, output_size, tile_b=128):
    """x: [B, input_size] float32.  params: folded/padded weights (see init_params)."""
    B, d_in = x.shape
    d_out_pad = params["w3"].shape[1]

    # Batch tile: multiple of 8 sublanes, capped at tile_b; pad B up to a tile multiple.
    TB = min(tile_b, _round_up(B, 8))
    n_tiles = pl.cdiv(B, TB)
    B_pad = TB * n_tiles

    x_bf = x.astype(jnp.bfloat16)
    if B_pad != B:
        x_bf = jnp.pad(x_bf, ((0, B_pad - B), (0, 0)))

    resident = lambda shape: pl.BlockSpec(shape, lambda i: (0, 0))

    out_pad = pl.pallas_call(
        weight_encoder_kernel,
        out_shape=jax.ShapeDtypeStruct((B_pad, d_out_pad), jnp.float32),
        grid_spec=pl.GridSpec(
            grid=(n_tiles,),
            in_specs=[
                pl.BlockSpec((TB, d_in), lambda i: (i, 0)),        # x  (batch-tiled)
                resident((d_in, L1_SIZE)), resident((1, L1_SIZE)),  # w1, b1 (resident)
                resident((L1_SIZE, L2_SIZE)), resident((1, L2_SIZE)),  # w2, b2
                resident((L2_SIZE, d_out_pad)), resident((1, d_out_pad)),  # w3, b3
            ],
            out_specs=pl.BlockSpec((TB, d_out_pad), lambda i: (i, 0)),
        ),
        compiler_params=pltpu.CompilerParams(
            dimension_semantics=("parallel",),      # megacore-shardable batch axis
            vmem_limit_bytes=32 * 1024 * 1024,
        ),
    )(
        x_bf,
        params["w1"], params["b1"],
        params["w2"], params["b2"],
        params["w3"], params["b3"],
    )

    return out_pad[:B, :output_size]


def init_params(key, input_size, output_size):
    """Build PyTorch-shaped params, fold BatchNorm(eval) into the Linears, pad the
    output layer to a lane-dense width, and cast weights to bf16 (biases stay f32)."""
    eps = 1e-5
    ks = jax.random.split(key, 12)

    def linear(kw, kb, fan_in, fan_out):
        bound = 1.0 / jnp.sqrt(fan_in)
        w = jax.random.uniform(kw, (fan_out, fan_in), jnp.float32, -bound, bound)
        b = jax.random.uniform(kb, (fan_out,), jnp.float32, -bound, bound)
        return w.T, b  # [in, out], [out]

    def bn_affine(kg, kb, km, kv, c):
        gamma = 1.0 + 0.1 * jax.random.normal(kg, (c,), jnp.float32)
        beta = 0.1 * jax.random.normal(kb, (c,), jnp.float32)
        rmean = 0.1 * jax.random.normal(km, (c,), jnp.float32)
        rvar = jnp.abs(1.0 + 0.1 * jax.random.normal(kv, (c,), jnp.float32))
        scale = gamma / jnp.sqrt(rvar + eps)
        shift = beta - rmean * scale
        return scale, shift

    w1, b1 = linear(ks[0], ks[1], input_size, L1_SIZE)
    s1, t1 = bn_affine(ks[2], ks[3], ks[4], ks[5], L1_SIZE)
    w2, b2 = linear(ks[6], ks[7], L1_SIZE, L2_SIZE)
    s2, t2 = bn_affine(ks[8], ks[9], ks[10], ks[11], L2_SIZE)
    w3, b3 = linear(ks[0], ks[6], L2_SIZE, output_size)  # deterministic key reuse

    # Fold BN into fc1 / fc2.
    w1f, b1f = w1 * s1[None, :], b1 * s1 + t1
    w2f, b2f = w2 * s2[None, :], b2 * s2 + t2

    # Lane-pad the output layer to a multiple of 128 for dense stores.
    d_out_pad = max(LANE, _round_up(output_size, LANE))
    w3p = jnp.zeros((L2_SIZE, d_out_pad), jnp.float32).at[:, :output_size].set(w3)
    b3p = jnp.zeros((d_out_pad,), jnp.float32).at[:output_size].set(b3)

    return {
        "w1": w1f.astype(jnp.bfloat16), "b1": b1f.reshape(1, L1_SIZE),
        "w2": w2f.astype(jnp.bfloat16), "b2": b2f.reshape(1, L2_SIZE),
        "w3": w3p.astype(jnp.bfloat16), "b3": b3p.reshape(1, d_out_pad),
    }


def reference_forward(x, p, output_size):
    """Pure-JAX reference following the same bf16-MXU / f32-accumulate dtype path."""
    bf = jnp.bfloat16
    h1 = jnp.maximum(
        jnp.dot(x.astype(bf), p["w1"], preferred_element_type=jnp.float32) + p["b1"], 0.0)
    h2 = jnp.maximum(
        jnp.dot(h1.astype(bf), p["w2"], preferred_element_type=jnp.float32) + p["b2"], 0.0)
    out = jnp.dot(h2.astype(bf), p["w3"], preferred_element_type=jnp.float32) + p["b3"]
    return out[:, :output_size]


if __name__ == "__main__":
    input_size = 32
    output_size = 16
    batch = 256           # tiled into 2 grid steps of 128 rows (parallel across TCs on v7x)

    key = jax.random.PRNGKey(0)
    kx, kp = jax.random.split(key)
    x = jax.random.normal(kx, (batch, input_size), jnp.float32)
    params = init_params(kp, input_size, output_size)

    out = weight_encoder_forward(x, params, output_size=output_size, tile_b=128)
    out = jax.block_until_ready(out)

    ref = reference_forward(x, params, output_size)
    assert out.shape == (batch, output_size)
    assert jnp.allclose(out, ref, atol=1e-2, rtol=1e-2), "mismatch vs JAX reference"

    print("KERNEL_OK")
</pallas_src>

<mosaic_0001>
module attributes {stable_mosaic.version = 11 : i64} {
  func.func @weight_encoder_kernel(%arg0: i32, %arg1: memref<128x32xbf16, #tpu.memory_space<vmem>>, %arg2: memref<32x64xbf16, #tpu.memory_space<vmem>>, %arg3: memref<1x64xf32, #tpu.memory_space<vmem>>, %arg4: memref<64x256xbf16, #tpu.memory_space<vmem>>, %arg5: memref<1x256xf32, #tpu.memory_space<vmem>>, %arg6: memref<256x128xbf16, #tpu.memory_space<vmem>>, %arg7: memref<1x128xf32, #tpu.memory_space<vmem>>, %arg8: memref<128x128xf32, #tpu.memory_space<vmem>>) attributes {dimension_semantics = [#tpu.dimension_semantics<parallel>], iteration_bounds = array<i64: 2>, scalar_prefetch = 0 : i64, scratch_operands = 0 : i64, tpu.core_type = #tpu.core_type<tc>, window_params = [{transform_indices = @transform_0, window_bounds = array<i64: 128, 32>}, {pipeline_mode = #tpu.pipeline_mode<synchronous>, transform_indices = @transform_1, window_bounds = array<i64: 32, 64>}, {pipeline_mode = #tpu.pipeline_mode<synchronous>, transform_indices = @transform_2, window_bounds = array<i64: 1, 64>}, {pipeline_mode = #tpu.pipeline_mode<synchronous>, transform_indices = @transform_3, window_bounds = array<i64: 64, 256>}, {pipeline_mode = #tpu.pipeline_mode<synchronous>, transform_indices = @transform_4, window_bounds = array<i64: 1, 256>}, {pipeline_mode = #tpu.pipeline_mode<synchronous>, transform_indices = @transform_5, window_bounds = array<i64: 256, 128>}, {pipeline_mode = #tpu.pipeline_mode<synchronous>, transform_indices = @transform_6, window_bounds = array<i64: 1, 128>}, {transform_indices = @transform_7, window_bounds = array<i64: 128, 128>}]} {
    %c0 = arith.constant 0 : index
    %c0_0 = arith.constant 0 : index
    %0 = vector.load %arg1[%c0, %c0_0] : memref<128x32xbf16, #tpu.memory_space<vmem>>, vector<128x32xbf16>
    %c0_1 = arith.constant 0 : index
    %c0_2 = arith.constant 0 : index
    %1 = vector.load %arg2[%c0_1, %c0_2] : memref<32x64xbf16, #tpu.memory_space<vmem>>, vector<32x64xbf16>
    %cst = arith.constant dense<0.000000e+00> : vector<128x64xf32>
    %2 = tpu.matmul %0, %1, %cst {dimension_numbers = #tpu.dot_dimension_numbers<[1], [0], [0], [1], [0, 0, 1, 1], [], []>} : vector<128x32xbf16>, vector<32x64xbf16>, vector<128x64xf32> -> vector<128x64xf32>
    %c0_3 = arith.constant 0 : index
    %c0_4 = arith.constant 0 : index
    %3 = vector.load %arg3[%c0_3, %c0_4] : memref<1x64xf32, #tpu.memory_space<vmem>>, vector<1x64xf32>
    %4 = vector.broadcast %3 : vector<1x64xf32> to vector<128x64xf32>
    %5 = arith.addf %2, %4 : vector<128x64xf32>
    %cst_5 = arith.constant 0.000000e+00 : f32
    %6 = vector.broadcast %cst_5 : f32 to vector<128x64xf32>
    %7 = arith.maximumf %5, %6 : vector<128x64xf32>
    %8 = arith.truncf %7 : vector<128x64xf32> to vector<128x64xbf16>
    %c0_6 = arith.constant 0 : index
    %c0_7 = arith.constant 0 : index
    %9 = vector.load %arg4[%c0_6, %c0_7] : memref<64x256xbf16, #tpu.memory_space<vmem>>, vector<64x256xbf16>
    %cst_8 = arith.constant dense<0.000000e+00> : vector<128x256xf32>
    %10 = tpu.matmul %8, %9, %cst_8 {dimension_numbers = #tpu.dot_dimension_numbers<[1], [0], [0], [1], [0, 0, 1, 1], [], []>} : vector<128x64xbf16>, vector<64x256xbf16>, vector<128x256xf32> -> vector<128x256xf32>
    %c0_9 = arith.constant 0 : index
    %c0_10 = arith.constant 0 : index
    %11 = vector.load %arg5[%c0_9, %c0_10] : memref<1x256xf32, #tpu.memory_space<vmem>>, vector<1x256xf32>
    %12 = vector.broadcast %11 : vector<1x256xf32> to vector<128x256xf32>
    %13 = arith.addf %10, %12 : vector<128x256xf32>
    %cst_11 = arith.constant 0.000000e+00 : f32
    %14 = vector.broadcast %cst_11 : f32 to vector<128x256xf32>
    %15 = arith.maximumf %13, %14 : vector<128x256xf32>
    %16 = arith.truncf %15 : vector<128x256xf32> to vector<128x256xbf16>
    %c0_12 = arith.constant 0 : index
    %c0_13 = arith.constant 0 : index
    %17 = vector.load %arg6[%c0_12, %c0_13] : memref<256x128xbf16, #tpu.memory_space<vmem>>, vector<256x128xbf16>
    %cst_14 = arith.constant dense<0.000000e+00> : vector<128x128xf32>
    %18 = tpu.matmul %16, %17, %cst_14 {dimension_numbers = #tpu.dot_dimension_numbers<[1], [0], [0], [1], [0, 0, 1, 1], [], []>} : vector<128x256xbf16>, vector<256x128xbf16>, vector<128x128xf32> -> vector<128x128xf32>
    %c0_15 = arith.constant 0 : index
    %c0_16 = arith.constant 0 : index
    %19 = vector.load %arg7[%c0_15, %c0_16] : memref<1x128xf32, #tpu.memory_space<vmem>>, vector<1x128xf32>
    %20 = vector.broadcast %19 : vector<1x128xf32> to vector<128x128xf32>
    %21 = arith.addf %18, %20 : vector<128x128xf32>
    %c0_17 = arith.constant 0 : index
    %c0_18 = arith.constant 0 : index
    %22 = vector.load %arg8[%c0_17, %c0_18] : memref<128x128xf32, #tpu.memory_space<vmem>>, vector<128x128xf32>
    tpu.vector_store %arg8[%c0_17, %c0_18], %21 {strides = array<i32>} : memref<128x128xf32, #tpu.memory_space<vmem>>, vector<128x128xf32>,
    return
  }
  func.func @transform_0(%arg0: i32) -> (i32, i32) {
    %c0_i32 = arith.constant 0 : i32
    %c0_i32_0 = arith.constant 0 : i32
    return %arg0, %c0_i32 : i32, i32
  }
  func.func @transform_1(%arg0: i32) -> (i32, i32) {
    %c0_i32 = arith.constant 0 : i32
    %c0_i32_0 = arith.constant 0 : i32
    %c0_i32_1 = arith.constant 0 : i32
    return %c0_i32, %c0_i32_0 : i32, i32
  }
  func.func @transform_2(%arg0: i32) -> (i32, i32) {
    %c0_i32 = arith.constant 0 : i32
    %c0_i32_0 = arith.constant 0 : i32
    %c0_i32_1 = arith.constant 0 : i32
    return %c0_i32, %c0_i32_0 : i32, i32
  }
  func.func @transform_3(%arg0: i32) -> (i32, i32) {
    %c0_i32 = arith.constant 0 : i32
    %c0_i32_0 = arith.constant 0 : i32
    %c0_i32_1 = arith.constant 0 : i32
    return %c0_i32, %c0_i32_0 : i32, i32
  }
  func.func @transform_4(%arg0: i32) -> (i32, i32) {
    %c0_i32 = arith.constant 0 : i32
    %c0_i32_0 = arith.constant 0 : i32
    %c0_i32_1 = arith.constant 0 : i32
    return %c0_i32, %c0_i32_0 : i32, i32
  }
  func.func @transform_5(%arg0: i32) -> (i32, i32) {
    %c0_i32 = arith.constant 0 : i32
    %c0_i32_0 = arith.constant 0 : i32
    %c0_i32_1 = arith.constant 0 : i32
    return %c0_i32, %c0_i32_0 : i32, i32
  }
  func.func @transform_6(%arg0: i32) -> (i32, i32) {
    %c0_i32 = arith.constant 0 : i32
    %c0_i32_0 = arith.constant 0 : i32
    %c0_i32_1 = arith.constant 0 : i32
    return %c0_i32, %c0_i32_0 : i32, i32
  }
  func.func @transform_7(%arg0: i32) -> (i32, i32) {
    %c0_i32 = arith.constant 0 : i32
    %c0_i32_0 = arith.constant 0 : i32
    return %arg0, %c0_i32 : i32, i32
  }
}

</mosaic_0001>

<bundles_post_ra>
// kernel: weight_encoder_forward.1
= control target key start
LH: loop header
LB: loop body
LE: loop exit
PB: predicated region body
PF: predicated region fallthrough
CT: control target
= control target key end

     0   :  { %s1327_s24 = smov 0   ;;  %s1557_s0 = inlined_call_operand.vmem [shape: bf16[256,32], index: 0, kind: input, shape index: {}]   ;;  %s1558_s1 = inlined_call_operand.vmem [shape: bf16[32,64], index: 1, kind: input, shape index: {}]   ;;  %s1559_s2 = inlined_call_operand.vmem [shape: f32[1,64], index: 2, kind: input, shape index: {}]   ;;  %s1560_s3 = inlined_call_operand.vmem [shape: bf16[64,256], index: 3, kind: input, shape index: {}]   ;;  %s1561_s4 = inlined_call_operand.vmem [shape: f32[1,256], index: 4, kind: input, shape index: {}]   ;;  %s1562_s5 = inlined_call_operand.vmem [shape: bf16[256,128], index: 5, kind: input, shape index: {}]   ;;  %s1563_s6 = inlined_call_operand.vmem [shape: f32[1,128], index: 6, kind: input, shape index: {}]   ;;  %s1564_s7 = inlined_call_operand.vmem [shape: f32[256,128], index: 7, kind: output, shape index: {}]  }
   0x1 LB: > { %s1058_s25 = sadd.s32 4294967295, %s1284_s24   ;;  %p1062_p0 = scmp.ge.s32.totalorder %s1284_s24, 1  ;;  %s1284_s24 = sphi %s1327_s24, %s17_s24  }
   0x2   : > { %p238_p1 = scmp.lt.s32.totalorder %s1284_s24, 3 }
   0x4   : > { %p239_p2 = pnand %p1062_p0, %p238_p1 }
   0x5   : > { %v1240_v0 = vld [vmem:[%s1558_s1] sm:$0xff] (!%p239_p2)   ;;  %s1063_s28 = sshll.u32 (!%p239_p2), %s1058_s25, 4  ;;  %v1241_v1 = vld [vmem:[%s1558_s1 + $0x8] sm:$0xff] (!%p239_p2)   ;;  %v1253_v4 = vld [vmem:[%s1560_s3 + $0x14] ss:$8 sps:$4 sm:$0xff] (!%p239_p2)   ;;  %vm362_vm0 = vcmask (!%p239_p2), 261120  }
   0x6   : > { %242 = sbr.rel (%p239_p2) target bundleno = 737 (0x2e1), region = 48  ;;  %p271_p3 = scmp.lt.s32.totalorder (!%p239_p2), %s1063_s28, 31  ;;  %1195 = vmatprep.subr.bf16.mxu0 (!%p239_p2), %v1240_v0  ;;  %v1250_v2 = vld [vmem:[%s1560_s3 + $0x4] ss:$8 sps:$4 sm:$0xff] (!%p239_p2)   ;;  %v1252_v3 = vld [vmem:[%s1560_s3] ss:$8 sps:$4 sm:$0xff] (!%p239_p2)  }
   0x7   : > { %1196 = vmatpush3.bf16.msra.mxu0 (!%p239_p2), %v1240_v0  ;;  %593 = vmatprep.subr.bf16.mxu1 (!%p239_p2), %v1250_v2  ;;  %v1255_v5 = vld [vmem:[%s1560_s3 + $0x10] ss:$8 sps:$4 sm:$0xff] (!%p239_p2)   ;;  %v1256_v14 = vld [vmem:[%s1560_s3 + $0x24] ss:$8 sps:$4 sm:$0xff] (!%p239_p2)   ;;  %v1258_v15 = vld [vmem:[%s1560_s3 + $0x20] ss:$8 sps:$4 sm:$0xff] (!%p239_p2)  }
   0x8   : > { %1197 = vmatprep.subr.bf16.mxu0 (!%p239_p2), %v1241_v1  ;;  %594 = vmatpush1.bf16.msra.mxu1 (!%p239_p2), %v1252_v3  ;;  %v1259_v16 = vld [vmem:[%s1560_s3 + $0x34] ss:$8 sps:$4 sm:$0xff] (!%p239_p2)   ;;  %v1261_v17 = vld [vmem:[%s1560_s3 + $0x30] ss:$8 sps:$4 sm:$0xff] (!%p239_p2)   ;;  %v1286_v18 = vmov (!%p239_p2), 0   ;;  %v1262_v19 = vld [vmem:[%s1562_s5 + $0x40] sm:$0xff] (!%p239_p2)  }
   0x9   : > { %595 = vmatprep.subr.bf16.mxu1 (!%p239_p2), %v1253_v4  ;;  %625 = vmatprep.mubr.bf16.mxu1 (!%p239_p2), %v1286_v18  ;;  %v1263_v20 = vld [vmem:[%s1562_s5] sm:$0xff] (!%p239_p2)   ;;  %v1264_v21 = vld [vmem:[%s1562_s5 + $0x48] sm:$0xff] (!%p239_p2)   ;;  %v1266_v23 = vld [vmem:[%s1562_s5 + $0x50] sm:$0xff] (!%p239_p2)   ;;  %vm568_vm1 = vcmask (!%p239_p2), 523264  }
   0xa   : > { %v1265_v22 = vld [vmem:[%s1562_s5 + $0x8] sm:$0xff] (!%p239_p2)   ;;  %v1267_v24 = vld [vmem:[%s1562_s5 + $0x10] sm:$0xff] (!%p239_p2)   ;;  %v1268_v25 = vld [vmem:[%s1562_s5 + $0x58] sm:$0xff] (!%p239_p2)  }
   0xb   : > { %1198 = vmatpush3.bf16.msra.mxu0 (!%p239_p2), %v1241_v1  ;;  %v1269_v26 = vld [vmem:[%s1562_s5 + $0x18] sm:$0xff] (!%p239_p2)   ;;  %v1270_v27 = vld [vmem:[%s1562_s5 + $0x60] sm:$0xff] (!%p239_p2)   ;;  %v1415_v29 = vld [vmem:[%s1562_s5 + $0x68] sm:$0xff] (!%p239_p2)  }
   0xc   : > { %596 = vmatpush1.bf16.msra.mxu1 (!%p239_p2), %v1255_v5  ;;  %1131 = vmatprep.subr.bf16.mxu0 (!%p239_p2), %v1262_v19  ;;  %v1410_v28 = vld [vmem:[%s1562_s5 + $0x20] sm:$0xff] (!%p239_p2)  }
   0xd   : > { %s1566_s28 = smov (!%p271_p3, %s1063_s28), 31  ;;  %597 = vmatprep.subr.bf16.mxu1 %v1256_v14  ;;  %v1422_v30 = vld [vmem:[%s1559_s2] ss:$0 sm:$0xff] }
   0xe   : > { %s1064_s16 = sshll.u32 %s1566_s28, 2  ;;  %s1066_s22 = sshll.u32 %s1566_s28, 3 }
   0xf   : > { %s274_s19 = scalar_lea.vmem %s1557_s0, %s1064_s16  ;;  %s1520_s29 = scalar_lea.vmem %s1564_s7, %s1066_s22 }
  0x10   : > { %v1242_v6 = vld [vmem:[%s274_s19] sm:$0xff]   ;;  %v1243_v7 = vld [vmem:[%s274_s19 + $0x8] sm:$0xff]   ;;  %v1244_v8 = vld [vmem:[%s274_s19 + $0x10] sm:$0xff]   ;;  %598 = vmatpush1.bf16.msra.mxu1 %v1258_v15 }
  0x11   : > { %1199 = vmatprep.mubr.msk.bf16.mxu0 %vm362_vm0, %v1242_v6  ;;  %v1245_v9 = vld [vmem:[%s274_s19 + $0x18] sm:$0xff]   ;;  %v1246_v10 = vld [vmem:[%s274_s19 + $0x20] sm:$0xff]   ;;  %v1247_v11 = vld [vmem:[%s274_s19 + $0x28] sm:$0xff]   ;;  %599 = vmatprep.subr.bf16.mxu1 %v1259_v16 }
  0x12   : > { %1200 = vmatmul.mubr.msk.bf16.vlgmr.msra.gmra.mrb[0].mxu0 %vm362_vm0, %v1243_v7  ;;  %v1248_v12 = vld [vmem:[%s274_s19 + $0x30] sm:$0xff]   ;;  %v1249_v13 = vld [vmem:[%s274_s19 + $0x38] sm:$0xff]  }
  0x13   : > { %1203 = vmatprep.mubr.msk.bf16.mxu0 %vm362_vm0, %v1244_v8  ;;  %1132 = vmatpush3.bf16.msra.mxu0 %v1263_v20 }
  0x14   : > { %600 = vmatpush1.bf16.msra.mxu1 %v1261_v17  ;;  %1133 = vmatprep.subr.bf16.mxu0 %v1264_v21 }
  0x15   : > { %1215 = vmatprep.subr.bf16.mxu1 %v1262_v19 }
  0x17   : > { %1134 = vmatpush3.bf16.msra.mxu0 %v1265_v22 }
  0x18   : > { %1135 = vmatprep.subr.bf16.mxu0 %v1266_v23 }
  0x1a   : > { %1204 = vmatmul.mubr.msk.bf16.gmra.mrb[4].mxu0 %vm362_vm0, %v1245_v9 }
  0x1b   : > { %1207 = vmatprep.mubr.msk.bf16.mxu0 %vm362_vm0, %v1246_v10  ;;  %1136 = vmatpush3.bf16.msra.mxu0 %v1267_v24 }
  0x1c   : > { %1137 = vmatprep.subr.bf16.mxu0 %v1268_v25 }
  0x1f   : > { %1138 = vmatpush3.bf16.msra.mxu0 %v1269_v26 }
  0x20   : > { %1139 = vmatprep.subr.bf16.mxu0 %v1270_v27 }
  0x22   : > { %1208 = vmatmul.mubr.msk.bf16.gmra.mrb[8].mxu0 %vm362_vm0, %v1247_v11 }
  0x23   : > { %1211 = vmatprep.mubr.msk.bf16.mxu0 %vm362_vm0, %v1248_v12  ;;  %1140 = vmatpush3.bf16.msra.mxu0 %v1410_v28 }
  0x24   : > { %1141 = vmatprep.subr.bf16.mxu0 %v1415_v29 }
  0x2a   : > { %1212 = vmatmul.mubr.msk.bf16.gmra.mrb[12].mxu0 %vm362_vm0, %v1249_v13 }
  0xe5   : > { %v1201_v31 = vpop.f32.mrb[0].mxu0 }
  0xe6   : > { %v430_v32 = vadd.f32 %v1201_v31, %v1422_v30  ;;  %v421_v33 = vpop.f32.mrb[1].mxu0  ;;  %v516_v31 = vld [vmem:[%s1561_s4] sm:$0x3] }
  0xe7   : > { %v422_v34 = vadd.f32 %v1422_v30, %v421_v33  ;;  %v1202_v35 = vpop.f32.mrb[2].mxu0 }
  0xe8   : > { %v433_v36 = vadd.f32 %v1202_v35, %v1422_v30  ;;  %v424_v37 = vpop.f32.mrb[3].mxu0  ;;  %v486_v39 = vmax.f32 %v430_v32, 0.0 }
  0xe9   : > { %v425_v38 = vadd.f32 %v1422_v30, %v424_v37  ;;  %v484_v41 = vmax.f32 %v422_v34, 0.0 }
  0xea   : > { %v487_v40 = vmax.f32 %v433_v36, 0.0 }
  0xeb   : > { %v485_v42 = vmax.f32 %v425_v38, 0.0 }
  0xec   : > { %v501_v43 = vpack.c.bf16 %v487_v40, %v486_v39 }
  0xed   : > { %v500_v44 = vpack.c.bf16 %v485_v42, %v484_v41  ;;  %v1205_v45 = vpop.f32.mrb[4].mxu0 }
  0xee   : > { %v446_v46 = vadd.f32 %v1205_v45, %v1422_v30  ;;  %v437_v47 = vpop.f32.mrb[5].mxu0 }
  0xef   : > { %1094 = vmatmul.mubr.msk.bf16.vlgmr.msra.gmra.mrb[0].mxu1 %vm568_vm1, %v500_v44  ;;  %v438_v48 = vadd.f32 %v1422_v30, %v437_v47  ;;  %v1206_v49 = vpop.f32.mrb[6].mxu0 }
  0xf0   : > { %v490_v50 = vmax.f32 %v446_v46, 0.0  ;;  %v449_v51 = vadd.f32 %v1206_v49, %v1422_v30  ;;  %v440_v52 = vpop.f32.mrb[7].mxu0  ;;  %635 = vmatprep.mubr.bf16.mxu1 %v1286_v18  ;;  %1223 = vmatpush3.bf16.msra.mxu1 %v1263_v20 }
  0xf1   : > { %v488_v53 = vmax.f32 %v438_v48, 0.0  ;;  %v441_v54 = vadd.f32 %v1422_v30, %v440_v52  ;;  %1216 = vmatprep.subr.bf16.mxu1 %v1264_v21 }
  0xf2   : > { %v491_v55 = vmax.f32 %v449_v51, 0.0 }
  0xf3   : > { %v489_v56 = vmax.f32 %v441_v54, 0.0 }
  0xf4   : > { %v503_v57 = vpack.c.bf16 %v491_v55, %v490_v50  ;;  %1224 = vmatpush3.bf16.msra.mxu1 %v1265_v22 }
  0xf5   : > { %v502_v58 = vpack.c.bf16 %v489_v56, %v488_v53  ;;  %v1209_v59 = vpop.f32.mrb[8].mxu0  ;;  %1217 = vmatprep.subr.bf16.mxu1 %v1266_v23 }
  0xf6   : > { %v462_v60 = vadd.f32 %v1209_v59, %v1422_v30  ;;  %v453_v61 = vpop.f32.mrb[9].mxu0 }
  0xf7   : > { %1095 = vmatmul.mubr.msk.bf16.gmra.mrb[4].mxu1 %vm568_vm1, %v501_v43  ;;  %v454_v62 = vadd.f32 %v1422_v30, %v453_v61  ;;  %v1210_v63 = vpop.f32.mrb[10].mxu0 }
  0xf8   : > { %645 = vmatprep.mubr.bf16.mxu1 %v1286_v18  ;;  %v494_v0 = vmax.f32 %v462_v60, 0.0  ;;  %v465_v1 = vadd.f32 %v1210_v63, %v1422_v30  ;;  %v456_v2 = vpop.f32.mrb[11].mxu0  ;;  %1225 = vmatpush3.bf16.msra.mxu1 %v1267_v24  ;;  %v1273_v24 = vld [vmem:[%s1562_s5 + $0x28] sm:$0xff]  }
  0xf9   : > { %v492_v3 = vmax.f32 %v454_v62, 0.0  ;;  %v457_v4 = vadd.f32 %v1422_v30, %v456_v2  ;;  %1218 = vmatprep.subr.bf16.mxu1 %v1268_v25  ;;  %1142 = vmatpush3.bf16.msra.mxu0 %v1273_v24  ;;  %v1274_v25 = vld [vmem:[%s1562_s5 + $0x70] sm:$0xff]  }
  0xfa   : > { %v495_v5 = vmax.f32 %v465_v1, 0.0  ;;  %1143 = vmatprep.subr.bf16.mxu0 %v1274_v25 }
  0xfb   : > { %v493_v6 = vmax.f32 %v457_v4, 0.0 }
  0xfc   : > { %v505_v7 = vpack.c.bf16 %v495_v5, %v494_v0  ;;  %1226 = vmatpush3.bf16.msra.mxu1 %v1269_v26  ;;  %v1275_v26 = vld [vmem:[%s1562_s5 + $0x30] sm:$0xff]  }
  0xfd   : > { %v504_v8 = vpack.c.bf16 %v493_v6, %v492_v3  ;;  %v1213_v9 = vpop.f32.mrb[12].mxu0  ;;  %1219 = vmatprep.subr.bf16.mxu1 %v1270_v27  ;;  %1144 = vmatpush3.bf16.msra.mxu0 %v1275_v26  ;;  %v1277_v27 = vld [vmem:[%s1562_s5 + $0x38] sm:$0xff]  }
  0xfe   : > { %v478_v10 = vadd.f32 %v1213_v9, %v1422_v30  ;;  %v469_v11 = vpop.f32.mrb[13].mxu0 }
  0xff   : > { %1096 = vmatmul.mubr.msk.bf16.gmra.mrb[8].mxu1 %vm568_vm1, %v502_v58  ;;  %v470_v12 = vadd.f32 %v1422_v30, %v469_v11  ;;  %v1214_v13 = vpop.f32.mrb[14].mxu0 }
 0x100   : > { %655 = vmatprep.mubr.bf16.mxu1 %v1286_v18  ;;  %v498_v14 = vmax.f32 %v478_v10, 0.0  ;;  %v481_v15 = vadd.f32 %v1214_v13, %v1422_v30  ;;  %v472_v16 = vpop.f32.mrb[15].mxu0  ;;  %1227 = vmatpush3.bf16.msra.mxu1 %v1410_v28  ;;  %v518_v28 = vlaneseq }
 0x101   : > { %v496_v17 = vmax.f32 %v470_v12, 0.0  ;;  %v473_v19 = vadd.f32 %v1422_v30, %v472_v16  ;;  %1220 = vmatprep.subr.bf16.mxu1 %v1415_v29 }
 0x102   : > { %v499_v20 = vmax.f32 %v481_v15, 0.0  ;;  %v519_v29 = vshrl.u32 %v518_v28, 7 }
 0x103   : > { %v497_v21 = vmax.f32 %v473_v19, 0.0 }
 0x104   : > { %v507_v22 = vpack.c.bf16 %v499_v20, %v498_v14  ;;  %1228 = vmatpush3.bf16.msra.mxu1 %v1273_v24  ;;  %v520_v30 = vsub.s32 0, %v519_v29  ;;  %v524_v32 = vsub.s32 1, %v519_v29 }
 0x105   : > { %v506_v23 = vpack.c.bf16 %v497_v21, %v496_v17  ;;  %1221 = vmatprep.subr.bf16.mxu1 %v1274_v25 }
 0x106   : > { %v1475_v33 = vrot.slane %v516_v31, %v520_v30  ;;  %v1477_v34 = vrot.slane %v516_v31, %v524_v32 }
 0x107   : > { %1097 = vmatmul.mubr.msk.bf16.gmra.mrb[12].mxu1 %vm568_vm1, %v503_v57 }
 0x108   : > { %665 = vmatprep.mubr.bf16.mxu1 %v1286_v18  ;;  %1229 = vmatpush3.bf16.msra.mxu1 %v1275_v26 }
 0x10f   : > { %1098 = vmatmul.mubr.msk.bf16.gmra.mrb[16].mxu1 %vm568_vm1, %v504_v8 }
 0x110   : > { %675 = vmatprep.mubr.bf16.mxu1 %v1286_v18 }
 0x117   : > { %1099 = vmatmul.mubr.msk.bf16.gmra.mrb[20].mxu1 %vm568_vm1, %v505_v7 }
 0x118   : > { %685 = vmatprep.mubr.bf16.mxu1 %v1286_v18 }
 0x11f   : > { %1100 = vmatmul.mubr.msk.bf16.gmra.mrb[24].mxu1 %vm568_vm1, %v506_v23 }
 0x120   : > { %695 = vmatprep.mubr.bf16.mxu1 %v1286_v18  ;;  %v1276_v18 = vld [vmem:[%s1562_s5 + $0x78] sm:$0xff]  }
 0x121   : > { %1145 = vmatprep.subr.bf16.mxu0 %v1276_v18  ;;  %1222 = vmatprep.subr.bf16.mxu1 %v1276_v18 }
 0x122   : > { %1146 = vmatpush3.bf16.msra.mxu0 %v1277_v27  ;;  %1230 = vmatpush3.bf16.msra.mxu1 %v1277_v27 }
 0x127   : > { %1101 = vmatmul.mubr.msk.bf16.gmra.mrb[28].mxu1 %vm568_vm1, %v507_v22 }
 0x1c2   : > { %v627_v35 = vpop.f32.mrb[0].mxu1 }
 0x1c3   : > { %v628_v36 = vadd.f32 %v627_v35, %v1475_v33  ;;  %v629_v37 = vpop.f32.mrb[1].mxu1 }
 0x1c4   : > { %v630_v38 = vadd.f32 %v629_v37, %v1477_v34  ;;  %v631_v39 = vpop.f32.mrb[2].mxu1 }
 0x1c5   : > { %v632_v40 = vadd.f32 %v631_v39, %v1475_v33  ;;  %v633_v41 = vpop.f32.mrb[3].mxu1  ;;  %v706_v43 = vmax.f32 %v628_v36, 0.0 }
 0x1c6   : > { %v634_v42 = vadd.f32 %v633_v41, %v1477_v34  ;;  %v707_v45 = vmax.f32 %v630_v38, 0.0 }
 0x1c7   : > { %v708_v44 = vmax.f32 %v632_v40, 0.0 }
 0x1c8   : > { %v709_v46 = vmax.f32 %v634_v42, 0.0 }
 0x1c9   : > { %v738_v47 = vpack.c.bf16 %v708_v44, %v706_v43 }
 0x1ca   : > { %v739_v48 = vpack.c.bf16 %v709_v46, %v707_v45  ;;  %v637_v49 = vpop.f32.mrb[4].mxu1 }
 0x1cb   : > { %v638_v50 = vadd.f32 %v637_v49, %v1475_v33  ;;  %v639_v51 = vpop.f32.mrb[5].mxu1 }
 0x1cc   : > { %v640_v52 = vadd.f32 %v639_v51, %v1477_v34  ;;  %v641_v53 = vpop.f32.mrb[6].mxu1  ;;  %921 = vmatprep.mubr.bf16.mxu0 %v739_v48 }
 0x1cd   : > { %v642_v54 = vadd.f32 %v641_v53, %v1475_v33  ;;  %v643_v55 = vpop.f32.mrb[7].mxu1  ;;  %922 = vmatmul.mubr.bf16.vlgmr.msra.gmra.mrb[16].mxu0 %v738_v47  ;;  %v710_v57 = vmax.f32 %v638_v50, 0.0 }
 0x1ce   : > { %v644_v56 = vadd.f32 %v643_v55, %v1477_v34  ;;  %v711_v59 = vmax.f32 %v640_v52, 0.0 }
 0x1cf   : > { %v712_v58 = vmax.f32 %v642_v54, 0.0 }
 0x1d0   : > { %v713_v60 = vmax.f32 %v644_v56, 0.0 }
 0x1d1   : > { %v740_v61 = vpack.c.bf16 %v712_v58, %v710_v57 }
 0x1d2   : > { %v741_v62 = vpack.c.bf16 %v713_v60, %v711_v59  ;;  %v647_v63 = vpop.f32.mrb[8].mxu1 }
 0x1d3   : > { %v648_v0 = vadd.f32 %v647_v63, %v1475_v33  ;;  %v649_v1 = vpop.f32.mrb[9].mxu1 }
 0x1d4   : > { %v650_v2 = vadd.f32 %v649_v1, %v1477_v34  ;;  %v651_v3 = vpop.f32.mrb[10].mxu1  ;;  %929 = vmatprep.mubr.bf16.mxu0 %v741_v62 }
 0x1d5   : > { %v652_v4 = vadd.f32 %v651_v3, %v1475_v33  ;;  %v653_v5 = vpop.f32.mrb[11].mxu1  ;;  %930 = vmatmul.mubr.bf16.gmra.mrb[20].mxu0 %v740_v61  ;;  %v714_v7 = vmax.f32 %v648_v0, 0.0 }
 0x1d6   : > { %v654_v6 = vadd.f32 %v653_v5, %v1477_v34  ;;  %v715_v9 = vmax.f32 %v650_v2, 0.0 }
 0x1d7   : > { %v716_v8 = vmax.f32 %v652_v4, 0.0 }
 0x1d8   : > { %v717_v10 = vmax.f32 %v654_v6, 0.0 }
 0x1d9   : > { %v742_v11 = vpack.c.bf16 %v716_v8, %v714_v7 }
 0x1da   : > { %v743_v12 = vpack.c.bf16 %v717_v10, %v715_v9  ;;  %v657_v13 = vpop.f32.mrb[12].mxu1 }
 0x1db   : > { %v658_v14 = vadd.f32 %v657_v13, %v1475_v33  ;;  %v659_v15 = vpop.f32.mrb[13].mxu1 }
 0x1dc   : > { %v660_v16 = vadd.f32 %v659_v15, %v1477_v34  ;;  %v661_v17 = vpop.f32.mrb[14].mxu1  ;;  %937 = vmatprep.mubr.bf16.mxu0 %v743_v12 }
 0x1dd   : > { %v662_v19 = vadd.f32 %v661_v17, %v1475_v33  ;;  %v663_v20 = vpop.f32.mrb[15].mxu1  ;;  %938 = vmatmul.mubr.bf16.gmra.mrb[24].mxu0 %v742_v11  ;;  %v718_v22 = vmax.f32 %v658_v14, 0.0 }
 0x1de   : > { %v664_v21 = vadd.f32 %v663_v20, %v1477_v34  ;;  %v719_v24 = vmax.f32 %v660_v16, 0.0 }
 0x1df   : > { %v720_v23 = vmax.f32 %v662_v19, 0.0 }
 0x1e0   : > { %v721_v25 = vmax.f32 %v664_v21, 0.0 }
 0x1e1   : > { %v744_v26 = vpack.c.bf16 %v720_v23, %v718_v22  ;;  %v1515_v23 = vld [vmem:[%s1563_s6] ss:$0 sm:$0xff] }
 0x1e2   : > { %v745_v18 = vpack.c.bf16 %v721_v25, %v719_v24  ;;  %v667_v27 = vpop.f32.mrb[16].mxu1 }
 0x1e3   : > { %v668_v28 = vadd.f32 %v667_v27, %v1475_v33  ;;  %v669_v29 = vpop.f32.mrb[17].mxu1 }
 0x1e4   : > { %v670_v30 = vadd.f32 %v669_v29, %v1477_v34  ;;  %v671_v31 = vpop.f32.mrb[18].mxu1  ;;  %945 = vmatprep.mubr.bf16.mxu0 %v745_v18 }
 0x1e5   : > { %v672_v32 = vadd.f32 %v671_v31, %v1475_v33  ;;  %v673_v35 = vpop.f32.mrb[19].mxu1  ;;  %946 = vmatmul.mubr.bf16.gmra.mrb[28].mxu0 %v744_v26  ;;  %v722_v37 = vmax.f32 %v668_v28, 0.0 }
 0x1e6   : > { %v674_v36 = vadd.f32 %v673_v35, %v1477_v34  ;;  %v723_v39 = vmax.f32 %v670_v30, 0.0 }
 0x1e7   : > { %v724_v38 = vmax.f32 %v672_v32, 0.0 }
 0x1e8   : > { %v725_v40 = vmax.f32 %v674_v36, 0.0 }
 0x1e9   : > { %v746_v41 = vpack.c.bf16 %v724_v38, %v722_v37 }
 0x1ea   : > { %v747_v42 = vpack.c.bf16 %v725_v40, %v723_v39  ;;  %v677_v43 = vpop.f32.mrb[20].mxu1 }
 0x1eb   : > { %v678_v44 = vadd.f32 %v677_v43, %v1475_v33  ;;  %v679_v45 = vpop.f32.mrb[21].mxu1 }
 0x1ec   : > { %v680_v46 = vadd.f32 %v679_v45, %v1477_v34  ;;  %v681_v47 = vpop.f32.mrb[22].mxu1  ;;  %953 = vmatprep.mubr.bf16.mxu0 %v747_v42 }
 0x1ed   : > { %v682_v48 = vadd.f32 %v681_v47, %v1475_v33  ;;  %v683_v49 = vpop.f32.mrb[23].mxu1  ;;  %954 = vmatmul.mubr.bf16.gmra.mrb[32].mxu0 %v746_v41  ;;  %v726_v51 = vmax.f32 %v678_v44, 0.0 }
 0x1ee   : > { %v684_v50 = vadd.f32 %v683_v49, %v1477_v34  ;;  %v727_v53 = vmax.f32 %v680_v46, 0.0 }
 0x1ef   : > { %v728_v52 = vmax.f32 %v682_v48, 0.0 }
 0x1f0   : > { %v729_v54 = vmax.f32 %v684_v50, 0.0 }
 0x1f1   : > { %v748_v55 = vpack.c.bf16 %v728_v52, %v726_v51 }
 0x1f2   : > { %v749_v56 = vpack.c.bf16 %v729_v54, %v727_v53  ;;  %v687_v57 = vpop.f32.mrb[24].mxu1 }
 0x1f3   : > { %v688_v58 = vadd.f32 %v687_v57, %v1475_v33  ;;  %v689_v59 = vpop.f32.mrb[25].mxu1 }
 0x1f4   : > { %v690_v60 = vadd.f32 %v689_v59, %v1477_v34  ;;  %v691_v61 = vpop.f32.mrb[26].mxu1  ;;  %961 = vmatprep.mubr.bf16.mxu0 %v749_v56 }
 0x1f5   : > { %v692_v62 = vadd.f32 %v691_v61, %v1475_v33  ;;  %v693_v63 = vpop.f32.mrb[27].mxu1  ;;  %962 = vmatmul.mubr.bf16.gmra.mrb[36].mxu0 %v748_v55  ;;  %v730_v1 = vmax.f32 %v688_v58, 0.0 }
 0x1f6   : > { %v694_v0 = vadd.f32 %v693_v63, %v1477_v34  ;;  %v731_v3 = vmax.f32 %v690_v60, 0.0 }
 0x1f7   : > { %v732_v2 = vmax.f32 %v692_v62, 0.0 }
 0x1f8   : > { %v733_v4 = vmax.f32 %v694_v0, 0.0 }
 0x1f9   : > { %v750_v5 = vpack.c.bf16 %v732_v2, %v730_v1 }
 0x1fa   : > { %v751_v6 = vpack.c.bf16 %v733_v4, %v731_v3  ;;  %v697_v7 = vpop.f32.mrb[28].mxu1 }
 0x1fb   : > { %v698_v8 = vadd.f32 %v697_v7, %v1475_v33  ;;  %v699_v9 = vpop.f32.mrb[29].mxu1 }
 0x1fc   : > { %v700_v10 = vadd.f32 %v699_v9, %v1477_v34  ;;  %v701_v11 = vpop.f32.mrb[30].mxu1  ;;  %969 = vmatprep.mubr.bf16.mxu0 %v751_v6 }
 0x1fd   : > { %v702_v12 = vadd.f32 %v701_v11, %v1475_v33  ;;  %v703_v13 = vpop.f32.mrb[31].mxu1  ;;  %970 = vmatmul.mubr.bf16.gmra.mrb[40].mxu0 %v750_v5  ;;  %v734_v15 = vmax.f32 %v698_v8, 0.0 }
 0x1fe   : > { %v704_v14 = vadd.f32 %v703_v13, %v1477_v34  ;;  %v735_v17 = vmax.f32 %v700_v10, 0.0 }
 0x1ff   : > { %v736_v16 = vmax.f32 %v702_v12, 0.0 }
 0x200   : > { %v737_v19 = vmax.f32 %v704_v14, 0.0 }
 0x201   : > { %v752_v20 = vpack.c.bf16 %v736_v16, %v734_v15 }
 0x202   : > { %v753_v21 = vpack.c.bf16 %v737_v19, %v735_v17 }
 0x204   : > { %977 = vmatprep.mubr.bf16.mxu1 %v753_v21 }
 0x205   : > { %978 = vmatmul.mubr.bf16.vlgmr.msra.gmra.mrb[32].mxu1 %v752_v20 }
 0x2a0   : > { %v1147_v22 = vpop.f32.mrb[16].mxu0 }
 0x2a1   : > { %v1148_v33 = vpop.f32.mrb[17].mxu0 }
 0x2a2   : > { %v1149_v24 = vadd.f32 %v1148_v33, %v1147_v22  ;;  %v1150_v25 = vpop.f32.mrb[18].mxu0 }
 0x2a3   : > { %v1151_v34 = vpop.f32.mrb[19].mxu0 }
 0x2a4   : > { %v924_v26 = vadd.f32 %v1149_v24, %v1515_v23  ;;  %v1152_v18 = vadd.f32 %v1151_v34, %v1150_v25 }
 0x2a6   : > { %986 = vst [vmem:[%s1520_s29] sm:$0xff] %v924_v26  ;;  %v927_v27 = vadd.f32 %v1152_v18, %v1515_v23 }
 0x2a8   : > { %987 = vst [vmem:[%s1520_s29 + $0x8] sm:$0xff] %v927_v27  ;;  %v1153_v28 = vpop.f32.mrb[20].mxu0 }
 0x2a9   : > { %v1154_v29 = vpop.f32.mrb[21].mxu0 }
 0x2aa   : > { %v1155_v30 = vadd.f32 %v1154_v29, %v1153_v28  ;;  %v1156_v31 = vpop.f32.mrb[22].mxu0 }
 0x2ab   : > { %v1157_v32 = vpop.f32.mrb[23].mxu0 }
 0x2ac   : > { %v932_v35 = vadd.f32 %v1155_v30, %v1515_v23  ;;  %v1158_v36 = vadd.f32 %v1157_v32, %v1156_v31 }
 0x2ae   : > { %988 = vst [vmem:[%s1520_s29 + $0x10] sm:$0xff] %v932_v35  ;;  %v935_v37 = vadd.f32 %v1158_v36, %v1515_v23 }
 0x2b0   : > { %989 = vst [vmem:[%s1520_s29 + $0x18] sm:$0xff] %v935_v37  ;;  %v1159_v38 = vpop.f32.mrb[24].mxu0 }
 0x2b1   : > { %v1160_v39 = vpop.f32.mrb[25].mxu0 }
 0x2b2   : > { %v1161_v40 = vadd.f32 %v1160_v39, %v1159_v38  ;;  %v1162_v41 = vpop.f32.mrb[26].mxu0 }
 0x2b3   : > { %v1163_v42 = vpop.f32.mrb[27].mxu0 }
 0x2b4   : > { %v940_v43 = vadd.f32 %v1161_v40, %v1515_v23  ;;  %v1164_v44 = vadd.f32 %v1163_v42, %v1162_v41 }
 0x2b6   : > { %990 = vst [vmem:[%s1520_s29 + $0x20] sm:$0xff] %v940_v43  ;;  %v943_v45 = vadd.f32 %v1164_v44, %v1515_v23 }
 0x2b8   : > { %991 = vst [vmem:[%s1520_s29 + $0x28] sm:$0xff] %v943_v45  ;;  %v1165_v46 = vpop.f32.mrb[28].mxu0 }
 0x2b9   : > { %v1166_v47 = vpop.f32.mrb[29].mxu0 }
 0x2ba   : > { %v1167_v48 = vadd.f32 %v1166_v47, %v1165_v46  ;;  %v1168_v49 = vpop.f32.mrb[30].mxu0 }
 0x2bb   : > { %v1169_v50 = vpop.f32.mrb[31].mxu0 }
 0x2bc   : > { %v948_v51 = vadd.f32 %v1167_v48, %v1515_v23  ;;  %v1170_v52 = vadd.f32 %v1169_v50, %v1168_v49 }
 0x2be   : > { %992 = vst [vmem:[%s1520_s29 + $0x30] sm:$0xff] %v948_v51  ;;  %v951_v53 = vadd.f32 %v1170_v52, %v1515_v23 }
 0x2c0   : > { %993 = vst [vmem:[%s1520_s29 + $0x38] sm:$0xff] %v951_v53  ;;  %v1171_v54 = vpop.f32.mrb[32].mxu0 }
 0x2c1   : > { %v1172_v55 = vpop.f32.mrb[33].mxu0 }
 0x2c2   : > { %v1173_v56 = vadd.f32 %v1172_v55, %v1171_v54  ;;  %v1174_v57 = vpop.f32.mrb[34].mxu0 }
 0x2c3   : > { %v1175_v58 = vpop.f32.mrb[35].mxu0 }
 0x2c4   : > { %v956_v59 = vadd.f32 %v1173_v56, %v1515_v23  ;;  %v1176_v60 = vadd.f32 %v1175_v58, %v1174_v57 }
 0x2c6   : > { %994 = vst [vmem:[%s1520_s29 + $0x40] sm:$0xff] %v956_v59  ;;  %v959_v61 = vadd.f32 %v1176_v60, %v1515_v23 }
 0x2c8   : > { %995 = vst [vmem:[%s1520_s29 + $0x48] sm:$0xff] %v959_v61  ;;  %v1177_v62 = vpop.f32.mrb[36].mxu0 }
 0x2c9   : > { %v1178_v63 = vpop.f32.mrb[37].mxu0 }
 0x2ca   : > { %v1179_v0 = vadd.f32 %v1178_v63, %v1177_v62  ;;  %v1180_v1 = vpop.f32.mrb[38].mxu0 }
 0x2cb   : > { %v1181_v2 = vpop.f32.mrb[39].mxu0 }
 0x2cc   : > { %v964_v3 = vadd.f32 %v1179_v0, %v1515_v23  ;;  %v1182_v4 = vadd.f32 %v1181_v2, %v1180_v1 }
 0x2ce   : > { %996 = vst [vmem:[%s1520_s29 + $0x50] sm:$0xff] %v964_v3  ;;  %v967_v5 = vadd.f32 %v1182_v4, %v1515_v23 }
 0x2d0   : > { %997 = vst [vmem:[%s1520_s29 + $0x58] sm:$0xff] %v967_v5  ;;  %v1183_v6 = vpop.f32.mrb[40].mxu0 }
 0x2d1   : > { %v1184_v7 = vpop.f32.mrb[41].mxu0 }
 0x2d2   : > { %v1185_v8 = vadd.f32 %v1184_v7, %v1183_v6  ;;  %v1186_v9 = vpop.f32.mrb[42].mxu0 }
 0x2d3   : > { %v1187_v10 = vpop.f32.mrb[43].mxu0 }
 0x2d4   : > { %v972_v11 = vadd.f32 %v1185_v8, %v1515_v23  ;;  %v1188_v12 = vadd.f32 %v1187_v10, %v1186_v9 }
 0x2d6   : > { %998 = vst [vmem:[%s1520_s29 + $0x60] sm:$0xff] %v972_v11  ;;  %v975_v13 = vadd.f32 %v1188_v12, %v1515_v23 }
 0x2d8   : > { %999 = vst [vmem:[%s1520_s29 + $0x68] sm:$0xff] %v975_v13  ;;  %v1189_v14 = vpop.f32.mrb[32].mxu1 }
 0x2d9   : > { %v1190_v15 = vpop.f32.mrb[33].mxu1 }
 0x2da   : > { %v1191_v16 = vadd.f32 %v1190_v15, %v1189_v14  ;;  %v1192_v17 = vpop.f32.mrb[34].mxu1 }
 0x2db   : > { %v1193_v19 = vpop.f32.mrb[35].mxu1 }
 0x2dc   : > { %v980_v20 = vadd.f32 %v1191_v16, %v1515_v23  ;;  %v1194_v21 = vadd.f32 %v1193_v19, %v1192_v17 }
 0x2de   : > { %1000 = vst [vmem:[%s1520_s29 + $0x70] sm:$0xff] %v980_v20  ;;  %v983_v22 = vadd.f32 %v1194_v21, %v1515_v23 }
 0x2e0   : > { %1001 = vst [vmem:[%s1520_s29 + $0x78] sm:$0xff] %v983_v22 }
 0x2e1 PF: > { %s17_s24 = sadd.s32 1, %s1284_s24  }
 0x2e2   : > { %p14_p4 = scmp.ge.s32.totalorder %s17_s24, 4  }
 0x2e4   :  { %16 = sbr.rel (!%p14_p4) target bundleno = 1 (0x1), region = 78 }

</bundles_post_ra>
